<compile_context>
chip_gen: v6e
topology: v6e:2x2x1
jax: 0.10.0
libtpu: 0.0.40
codegen_flags: <defaults>
</compile_context>

<pallas_src>
import functools

import jax
import jax.numpy as jnp
from jax import lax
from jax.experimental import pallas as pl
from jax.experimental.pallas import tpu as pltpu


LOG_STD_MIN = -20.0
LOG_STD_MAX = 2.0

_LANE = 128      # vreg lane width
_SUBLANE = 8     # f32 sublane grain


def _round_up(x, m):
    return (x + m - 1) // m * m


def _cdiv(a, b):
    return -(-a // b)


def _pad2d(a, rows, cols):
    r, c = a.shape
    if r == rows and c == cols:
        return a
    return jnp.pad(a, ((0, rows - r), (0, cols - c)))


def _policy_kernel(s_ref, t_ref,
                   w1s_ref, w1t_ref, b1_ref,
                   w2_ref, b2_ref,
                   w3_ref, b3_ref,
                   wh_ref, bh_ref,
                   out_ref,
                   *, num_actions):
    """One batch tile: 3-layer MLP + packed (mean | log_std) 128-lane head."""
    f32 = jnp.float32
    cdt = w2_ref.dtype                      # matmul operand dtype (bf16 or f32)

    # Layer 1: cat([states, templates]) @ W1 == states @ W1_s + templates @ W1_t
    # (concat folded into the kernel; MXU accumulates in f32).
    h = (jnp.dot(s_ref[...], w1s_ref[...], preferred_element_type=f32)
         + jnp.dot(t_ref[...], w1t_ref[...], preferred_element_type=f32)
         + b1_ref[...])
    h = jnp.maximum(h, 0.0)
    h = jnp.dot(h.astype(cdt), w2_ref[...], preferred_element_type=f32) + b2_ref[...]
    h = jnp.maximum(h, 0.0)
    h = jnp.dot(h.astype(cdt), w3_ref[...], preferred_element_type=f32) + b3_ref[...]

    # Packed head: lanes [0:A) -> mean (tanh), [A:2A) -> log_std (clamp),
    # remaining lanes are zero padding (discarded by the wrapper slice).
    heads = jnp.dot(h.astype(cdt), wh_ref[...], preferred_element_type=f32) + bh_ref[...]
    lane = lax.broadcasted_iota(jnp.int32, heads.shape, dimension=1)
    out_ref[...] = jnp.where(lane < num_actions,
                             jnp.tanh(heads),
                             jnp.clip(heads, LOG_STD_MIN, LOG_STD_MAX))


def policy_network_forward(states, templates_one_hot, params, *,
                           compute_dtype=jnp.bfloat16, batch_tile=1024):
    """Batch-tiled Pallas forward. Returns (mean, log_std) of shape [B, A]."""
    states = jnp.asarray(states, jnp.float32)
    templates_one_hot = jnp.asarray(templates_one_hot, jnp.float32)
    B, S = states.shape
    T = templates_one_hot.shape[1]
    H1 = params["w1"].shape[1]
    H2 = params["w2"].shape[1]
    H3 = params["w3"].shape[1]
    A = params["wm"].shape[1]

    # Only hidden/output feature dims are padded to the 128-lane grain; the
    # activation input widths (S, T) stay at their true sizes.
    H1_p = _round_up(H1, _LANE)
    H2_p = _round_up(H2, _LANE)
    H3_p = _round_up(H3, _LANE)
    A_pack = _round_up(2 * A, _LANE)        # packed (mean | log_std) head width

    # Grid / tile selection: minimal batch padding; >=2 steps when possible so
    # the "parallel" batch axis gives both v7x TensorCores work.
    nsteps = _cdiv(B, batch_tile)
    if nsteps == 1 and B > _SUBLANE:
        nsteps = 2
    TM = _round_up(_cdiv(B, nsteps), _SUBLANE)
    B_p = nsteps * TM
    grid = (nsteps,)

    cd = jnp.dtype(compute_dtype)
    s_p = _pad2d(states, B_p, S).astype(cd)
    t_p = _pad2d(templates_one_hot, B_p, T).astype(cd)

    # Weights in [in_features, out_features] layout (torch weight transposed).
    # Zero padding on output dims preserves semantics through dot/bias/ReLU.
    w1 = params["w1"]
    w1s = _pad2d(w1[:S, :], S, H1_p).astype(cd)
    w1t = _pad2d(w1[S:, :], T, H1_p).astype(cd)
    w2 = _pad2d(params["w2"], H1_p, H2_p).astype(cd)
    w3 = _pad2d(params["w3"], H2_p, H3_p).astype(cd)
    wh = (jnp.zeros((H3_p, A_pack), jnp.float32)
          .at[:H3, :A].set(params["wm"])
          .at[:H3, A:2 * A].set(params["ws"])).astype(cd)

    b1 = _pad2d(params["b1"], 1, H1_p).astype(jnp.float32)
    b2 = _pad2d(params["b2"], 1, H2_p).astype(jnp.float32)
    b3 = _pad2d(params["b3"], 1, H3_p).astype(jnp.float32)
    bh = (jnp.zeros((1, A_pack), jnp.float32)
          .at[:, :A].set(params["bm"])
          .at[:, A:2 * A].set(params["bs"]))

    x_map = lambda i: (i, 0)          # batch-tiled arrays
    const_map = lambda i: (0, 0)      # weights/biases resident across the grid
    full = lambda r, c: pl.BlockSpec((r, c), const_map)

    w_item = cd.itemsize
    flops = 2 * B_p * ((S + T) * H1_p + H1_p * H2_p + H2_p * H3_p + H3_p * A_pack)
    bytes_accessed = ((s_p.size + t_p.size) * w_item
                      + (w1s.size + w1t.size + w2.size + w3.size + wh.size) * w_item
                      + (b1.size + b2.size + b3.size + bh.size) * 4
                      + B_p * A_pack * 4)
    cost = pl.CostEstimate(flops=flops, transcendentals=B_p * A_pack,
                           bytes_accessed=bytes_accessed)

    out = pl.pallas_call(
        functools.partial(_policy_kernel, num_actions=A),
        out_shape=jax.ShapeDtypeStruct((B_p, A_pack), jnp.float32),
        grid=grid,
        in_specs=[
            pl.BlockSpec((TM, S), x_map),
            pl.BlockSpec((TM, T), x_map),
            full(S, H1_p), full(T, H1_p), full(1, H1_p),
            full(H1_p, H2_p), full(1, H2_p),
            full(H2_p, H3_p), full(1, H3_p),
            full(H3_p, A_pack), full(1, A_pack),
        ],
        out_specs=pl.BlockSpec((TM, A_pack), x_map),
        compiler_params=pltpu.CompilerParams(
            dimension_semantics=("parallel",)),
        cost_estimate=cost,
    )(s_p, t_p, w1s, w1t, b1, w2, b2, w3, b3, wh, bh)

    mean = out[:B, :A]
    log_std = out[:B, A:2 * A]
    return mean, log_std


def _reference_forward(states, templates_one_hot, params):
    """Pure-JAX reference (matches the PyTorch module)."""
    x = jnp.concatenate([states, templates_one_hot], axis=-1).astype(jnp.float32)
    h = jnp.maximum(x @ params["w1"] + params["b1"], 0.0)
    h = jnp.maximum(h @ params["w2"] + params["b2"], 0.0)
    h = h @ params["w3"] + params["b3"]
    mean = jnp.tanh(h @ params["wm"] + params["bm"])
    log_std = jnp.clip(h @ params["ws"] + params["bs"], LOG_STD_MIN, LOG_STD_MAX)
    return mean, log_std


def init_params(key, pi_spec, num_actions, init_w=0.003):
    """Parameter init mirroring the torch module's shapes.

    pi_spec = [in_dim, h1, h2, h3]; heads map h3 -> num_actions.
    Hidden linears: U(-1/sqrt(fan_in), 1/sqrt(fan_in)) (torch default);
    mean/log_std heads: U(-init_w, init_w) like uniform_initialize.
    """
    keys = jax.random.split(key, 10)

    def lin(kw, kb, fan_in, fan_out, bound):
        w = jax.random.uniform(kw, (fan_in, fan_out), jnp.float32, -bound, bound)
        b = jax.random.uniform(kb, (1, fan_out), jnp.float32, -bound, bound)
        return w, b

    w1, b1 = lin(keys[0], keys[1], pi_spec[0], pi_spec[1], 1.0 / (pi_spec[0] ** 0.5))
    w2, b2 = lin(keys[2], keys[3], pi_spec[1], pi_spec[2], 1.0 / (pi_spec[1] ** 0.5))
    w3, b3 = lin(keys[4], keys[5], pi_spec[2], pi_spec[3], 1.0 / (pi_spec[2] ** 0.5))
    wm, bm = lin(keys[6], keys[7], pi_spec[3], num_actions, init_w)
    ws, bs = lin(keys[8], keys[9], pi_spec[3], num_actions, init_w)
    return dict(w1=w1, b1=b1, w2=w2, b2=b2, w3=w3, b3=b3,
                wm=wm, bm=bm, ws=ws, bs=bs)


if __name__ == "__main__":
    # Small shapes consistent with the module:
    #   states: [B, 12], templates_one_hot: [B, 4] -> concat dim 16
    #   Pi_network spec = [16, 32, 32, 32], num_actions = 4
    B = 2
    STATE_DIM, TMPL_DIM = 12, 4
    PI_SPEC = [STATE_DIM + TMPL_DIM, 32, 32, 32]
    NUM_ACTIONS = 4

    key = jax.random.PRNGKey(0)
    k_s, k_t, k_p = jax.random.split(key, 3)

    states = jax.random.normal(k_s, (B, STATE_DIM), jnp.float32)
    templates_one_hot = jax.nn.one_hot(
        jax.random.randint(k_t, (B,), 0, TMPL_DIM), TMPL_DIM, dtype=jnp.float32)

    params = init_params(k_p, PI_SPEC, NUM_ACTIONS)
    ref_mean, ref_log_std = _reference_forward(states, templates_one_hot, params)

    # f32-operand path: bit-tight check against the pure-JAX reference.
    mean_f32, log_std_f32 = policy_network_forward(
        states, templates_one_hot, params, compute_dtype=jnp.float32)
    jax.block_until_ready((mean_f32, log_std_f32))
    assert mean_f32.shape == (B, NUM_ACTIONS) and log_std_f32.shape == (B, NUM_ACTIONS)
    assert bool(jnp.allclose(mean_f32, ref_mean, rtol=1e-5, atol=1e-5))
    assert bool(jnp.allclose(log_std_f32, ref_log_std, rtol=1e-5, atol=1e-5))

    # Default bf16-operand path (fast MXU path on every generation): loose check,
    # since bf16 rounding of the matmul operands is expected precision loss.
    mean, log_std = policy_network_forward(states, templates_one_hot, params)
    jax.block_until_ready((mean, log_std))
    assert mean.shape == (B, NUM_ACTIONS) and log_std.shape == (B, NUM_ACTIONS)
    assert bool(jnp.all(jnp.abs(mean) <= 1.0))
    assert bool(jnp.all((log_std >= LOG_STD_MIN) & (log_std <= LOG_STD_MAX)))
    assert bool(jnp.allclose(mean, ref_mean, rtol=5e-2, atol=5e-2))
    assert bool(jnp.allclose(log_std, ref_log_std, rtol=5e-2, atol=5e-2))

    print("KERNEL_OK")
</pallas_src>

<mosaic_0001>
module attributes {stable_mosaic.version = 11 : i64} {
  func.func @_policy_kernel(%arg0: i32, %arg1: memref<8x12xf32, #tpu.memory_space<vmem>>, %arg2: memref<8x4xf32, #tpu.memory_space<vmem>>, %arg3: memref<12x128xf32, #tpu.memory_space<vmem>>, %arg4: memref<4x128xf32, #tpu.memory_space<vmem>>, %arg5: memref<1x128xf32, #tpu.memory_space<vmem>>, %arg6: memref<128x128xf32, #tpu.memory_space<vmem>>, %arg7: memref<1x128xf32, #tpu.memory_space<vmem>>, %arg8: memref<128x128xf32, #tpu.memory_space<vmem>>, %arg9: memref<1x128xf32, #tpu.memory_space<vmem>>, %arg10: memref<128x128xf32, #tpu.memory_space<vmem>>, %arg11: memref<1x128xf32, #tpu.memory_space<vmem>>, %arg12: memref<8x128xf32, #tpu.memory_space<vmem>>) attributes {dimension_semantics = [#tpu.dimension_semantics<parallel>], iteration_bounds = array<i64: 1>, scalar_prefetch = 0 : i64, scratch_operands = 0 : i64, tpu.core_type = #tpu.core_type<tc>, window_params = [{transform_indices = @transform_0, window_bounds = array<i64: 8, 12>}, {transform_indices = @transform_1, window_bounds = array<i64: 8, 4>}, {pipeline_mode = #tpu.pipeline_mode<synchronous>, transform_indices = @transform_2, window_bounds = array<i64: 12, 128>}, {pipeline_mode = #tpu.pipeline_mode<synchronous>, transform_indices = @transform_3, window_bounds = array<i64: 4, 128>}, {pipeline_mode = #tpu.pipeline_mode<synchronous>, transform_indices = @transform_4, window_bounds = array<i64: 1, 128>}, {pipeline_mode = #tpu.pipeline_mode<synchronous>, transform_indices = @transform_5, window_bounds = array<i64: 128, 128>}, {pipeline_mode = #tpu.pipeline_mode<synchronous>, transform_indices = @transform_6, window_bounds = array<i64: 1, 128>}, {pipeline_mode = #tpu.pipeline_mode<synchronous>, transform_indices = @transform_7, window_bounds = array<i64: 128, 128>}, {pipeline_mode = #tpu.pipeline_mode<synchronous>, transform_indices = @transform_8, window_bounds = array<i64: 1, 128>}, {pipeline_mode = #tpu.pipeline_mode<synchronous>, transform_indices = @transform_9, window_bounds = array<i64: 128, 128>}, {pipeline_mode = #tpu.pipeline_mode<synchronous>, transform_indices = @transform_10, window_bounds = array<i64: 1, 128>}, {transform_indices = @transform_11, window_bounds = array<i64: 8, 128>}]} {
    %c0 = arith.constant 0 : index
    %c0_0 = arith.constant 0 : index
    %0 = vector.load %arg1[%c0, %c0_0] : memref<8x12xf32, #tpu.memory_space<vmem>>, vector<8x12xf32>
    %c0_1 = arith.constant 0 : index
    %c0_2 = arith.constant 0 : index
    %1 = vector.load %arg3[%c0_1, %c0_2] : memref<12x128xf32, #tpu.memory_space<vmem>>, vector<12x128xf32>
    %cst = arith.constant dense<0.000000e+00> : vector<8x128xf32>
    %2 = tpu.matmul %0, %1, %cst {dimension_numbers = #tpu.dot_dimension_numbers<[1], [0], [0], [1], [0, 0, 1, 1], [], []>} : vector<8x12xf32>, vector<12x128xf32>, vector<8x128xf32> -> vector<8x128xf32>
    %c0_3 = arith.constant 0 : index
    %c0_4 = arith.constant 0 : index
    %3 = vector.load %arg2[%c0_3, %c0_4] : memref<8x4xf32, #tpu.memory_space<vmem>>, vector<8x4xf32>
    %c0_5 = arith.constant 0 : index
    %c0_6 = arith.constant 0 : index
    %4 = vector.load %arg4[%c0_5, %c0_6] : memref<4x128xf32, #tpu.memory_space<vmem>>, vector<4x128xf32>
    %cst_7 = arith.constant dense<0.000000e+00> : vector<8x128xf32>
    %5 = tpu.matmul %3, %4, %cst_7 {dimension_numbers = #tpu.dot_dimension_numbers<[1], [0], [0], [1], [0, 0, 1, 1], [], []>} : vector<8x4xf32>, vector<4x128xf32>, vector<8x128xf32> -> vector<8x128xf32>
    %6 = arith.addf %2, %5 : vector<8x128xf32>
    %c0_8 = arith.constant 0 : index
    %c0_9 = arith.constant 0 : index
    %7 = vector.load %arg5[%c0_8, %c0_9] : memref<1x128xf32, #tpu.memory_space<vmem>>, vector<1x128xf32>
    %8 = vector.broadcast %7 : vector<1x128xf32> to vector<8x128xf32>
    %9 = arith.addf %6, %8 : vector<8x128xf32>
    %cst_10 = arith.constant 0.000000e+00 : f32
    %10 = vector.broadcast %cst_10 : f32 to vector<8x128xf32>
    %11 = arith.maximumf %9, %10 : vector<8x128xf32>
    %c0_11 = arith.constant 0 : index
    %c0_12 = arith.constant 0 : index
    %12 = vector.load %arg6[%c0_11, %c0_12] : memref<128x128xf32, #tpu.memory_space<vmem>>, vector<128x128xf32>
    %cst_13 = arith.constant dense<0.000000e+00> : vector<8x128xf32>
    %13 = tpu.matmul %11, %12, %cst_13 {dimension_numbers = #tpu.dot_dimension_numbers<[1], [0], [0], [1], [0, 0, 1, 1], [], []>} : vector<8x128xf32>, vector<128x128xf32>, vector<8x128xf32> -> vector<8x128xf32>
    %c0_14 = arith.constant 0 : index
    %c0_15 = arith.constant 0 : index
    %14 = vector.load %arg7[%c0_14, %c0_15] : memref<1x128xf32, #tpu.memory_space<vmem>>, vector<1x128xf32>
    %15 = vector.broadcast %14 : vector<1x128xf32> to vector<8x128xf32>
    %16 = arith.addf %13, %15 : vector<8x128xf32>
    %cst_16 = arith.constant 0.000000e+00 : f32
    %17 = vector.broadcast %cst_16 : f32 to vector<8x128xf32>
    %18 = arith.maximumf %16, %17 : vector<8x128xf32>
    %c0_17 = arith.constant 0 : index
    %c0_18 = arith.constant 0 : index
    %19 = vector.load %arg8[%c0_17, %c0_18] : memref<128x128xf32, #tpu.memory_space<vmem>>, vector<128x128xf32>
    %cst_19 = arith.constant dense<0.000000e+00> : vector<8x128xf32>
    %20 = tpu.matmul %18, %19, %cst_19 {dimension_numbers = #tpu.dot_dimension_numbers<[1], [0], [0], [1], [0, 0, 1, 1], [], []>} : vector<8x128xf32>, vector<128x128xf32>, vector<8x128xf32> -> vector<8x128xf32>
    %c0_20 = arith.constant 0 : index
    %c0_21 = arith.constant 0 : index
    %21 = vector.load %arg9[%c0_20, %c0_21] : memref<1x128xf32, #tpu.memory_space<vmem>>, vector<1x128xf32>
    %22 = vector.broadcast %21 : vector<1x128xf32> to vector<8x128xf32>
    %23 = arith.addf %20, %22 : vector<8x128xf32>
    %c0_22 = arith.constant 0 : index
    %c0_23 = arith.constant 0 : index
    %24 = vector.load %arg10[%c0_22, %c0_23] : memref<128x128xf32, #tpu.memory_space<vmem>>, vector<128x128xf32>
    %cst_24 = arith.constant dense<0.000000e+00> : vector<8x128xf32>
    %25 = tpu.matmul %23, %24, %cst_24 {dimension_numbers = #tpu.dot_dimension_numbers<[1], [0], [0], [1], [0, 0, 1, 1], [], []>} : vector<8x128xf32>, vector<128x128xf32>, vector<8x128xf32> -> vector<8x128xf32>
    %c0_25 = arith.constant 0 : index
    %c0_26 = arith.constant 0 : index
    %26 = vector.load %arg11[%c0_25, %c0_26] : memref<1x128xf32, #tpu.memory_space<vmem>>, vector<1x128xf32>
    %27 = vector.broadcast %26 : vector<1x128xf32> to vector<8x128xf32>
    %28 = arith.addf %25, %27 : vector<8x128xf32>
    %29 = tpu.iota {dimensions = array<i32: 1>} : vector<8x128xi32>
    %c4_i32 = arith.constant 4 : i32
    %30 = vector.broadcast %c4_i32 : i32 to vector<8x128xi32>
    %31 = arith.cmpi slt, %29, %30 : vector<8x128xi32>
    %32 = math.tanh %28 : vector<8x128xf32>
    %cst_27 = arith.constant -2.000000e+01 : f32
    %cst_28 = arith.constant 2.000000e+00 : f32
    %33 = vector.broadcast %cst_27 : f32 to vector<8x128xf32>
    %34 = arith.maximumf %33, %28 : vector<8x128xf32>
    %35 = vector.broadcast %cst_28 : f32 to vector<8x128xf32>
    %36 = arith.minimumf %35, %34 : vector<8x128xf32>
    %37 = arith.select %31, %32, %36 : vector<8x128xi1>, vector<8x128xf32>
    %c0_29 = arith.constant 0 : index
    %c0_30 = arith.constant 0 : index
    %38 = vector.load %arg12[%c0_29, %c0_30] : memref<8x128xf32, #tpu.memory_space<vmem>>, vector<8x128xf32>
    tpu.vector_store %arg12[%c0_29, %c0_30], %37 {strides = array<i32>} : memref<8x128xf32, #tpu.memory_space<vmem>>, vector<8x128xf32>,
    return
  }
  func.func @transform_0(%arg0: i32) -> (i32, i32) {
    %c0_i32 = arith.constant 0 : i32
    %c0_i32_0 = arith.constant 0 : i32
    return %arg0, %c0_i32 : i32, i32
  }
  func.func @transform_1(%arg0: i32) -> (i32, i32) {
    %c0_i32 = arith.constant 0 : i32
    %c0_i32_0 = arith.constant 0 : i32
    return %arg0, %c0_i32 : i32, i32
  }
  func.func @transform_2(%arg0: i32) -> (i32, i32) {
    %c0_i32 = arith.constant 0 : i32
    %c0_i32_0 = arith.constant 0 : i32
    %c0_i32_1 = arith.constant 0 : i32
    return %c0_i32, %c0_i32_0 : i32, i32
  }
  func.func @transform_3(%arg0: i32) -> (i32, i32) {
    %c0_i32 = arith.constant 0 : i32
    %c0_i32_0 = arith.constant 0 : i32
    %c0_i32_1 = arith.constant 0 : i32
    return %c0_i32, %c0_i32_0 : i32, i32
  }
  func.func @transform_4(%arg0: i32) -> (i32, i32) {
    %c0_i32 = arith.constant 0 : i32
    %c0_i32_0 = arith.constant 0 : i32
    %c0_i32_1 = arith.constant 0 : i32
    return %c0_i32, %c0_i32_0 : i32, i32
  }
  func.func @transform_5(%arg0: i32) -> (i32, i32) {
    %c0_i32 = arith.constant 0 : i32
    %c0_i32_0 = arith.constant 0 : i32
    %c0_i32_1 = arith.constant 0 : i32
    return %c0_i32, %c0_i32_0 : i32, i32
  }
  func.func @transform_6(%arg0: i32) -> (i32, i32) {
    %c0_i32 = arith.constant 0 : i32
    %c0_i32_0 = arith.constant 0 : i32
    %c0_i32_1 = arith.constant 0 : i32
    return %c0_i32, %c0_i32_0 : i32, i32
  }
  func.func @transform_7(%arg0: i32) -> (i32, i32) {
    %c0_i32 = arith.constant 0 : i32
    %c0_i32_0 = arith.constant 0 : i32
    %c0_i32_1 = arith.constant 0 : i32
    return %c0_i32, %c0_i32_0 : i32, i32
  }
  func.func @transform_8(%arg0: i32) -> (i32, i32) {
    %c0_i32 = arith.constant 0 : i32
    %c0_i32_0 = arith.constant 0 : i32
    %c0_i32_1 = arith.constant 0 : i32
    return %c0_i32, %c0_i32_0 : i32, i32
  }
  func.func @transform_9(%arg0: i32) -> (i32, i32) {
    %c0_i32 = arith.constant 0 : i32
    %c0_i32_0 = arith.constant 0 : i32
    %c0_i32_1 = arith.constant 0 : i32
    return %c0_i32, %c0_i32_0 : i32, i32
  }
  func.func @transform_10(%arg0: i32) -> (i32, i32) {
    %c0_i32 = arith.constant 0 : i32
    %c0_i32_0 = arith.constant 0 : i32
    %c0_i32_1 = arith.constant 0 : i32
    return %c0_i32, %c0_i32_0 : i32, i32
  }
  func.func @transform_11(%arg0: i32) -> (i32, i32) {
    %c0_i32 = arith.constant 0 : i32
    %c0_i32_0 = arith.constant 0 : i32
    return %arg0, %c0_i32 : i32, i32
  }
}

</mosaic_0001>

<bundles_post_ra>
// kernel: tpu_custom_call.1
= control target key start
LH: loop header
LB: loop body
LE: loop exit
PB: predicated region body
PF: predicated region fallthrough
CT: control target
= control target key end

     0   :  { %16 = vsyncpa [#allocation3], 0  ;;  %s1046_s0 = inlined_call_operand.vmem [shape: f32[8,12], index: 0, kind: input, shape index: {}]   ;;  %s1047_s1 = inlined_call_operand.vmem [shape: f32[8,4], index: 1, kind: input, shape index: {}]   ;;  %s1048_s2 = inlined_call_operand.hbm [shape: f32[12,128], index: 2, kind: input, shape index: {}]   ;;  %s1049_s3 = inlined_call_operand.vmem [shape: f32[4,128], index: 3, kind: input, shape index: {}]   ;;  %s1050_s4 = inlined_call_operand.vmem [shape: f32[1,128], index: 4, kind: input, shape index: {}]   ;;  %s1051_s5 = inlined_call_operand.hbm [shape: f32[128,128], index: 5, kind: input, shape index: {}]   ;;  %s1052_s6 = inlined_call_operand.vmem [shape: f32[1,128], index: 6, kind: input, shape index: {}]   ;;  %s1053_s7 = inlined_call_operand.hbm [shape: f32[128,128], index: 7, kind: input, shape index: {}]   ;;  %s1054_s8 = inlined_call_operand.vmem [shape: f32[1,128], index: 8, kind: input, shape index: {}]   ;;  %s1055_s9 = inlined_call_operand.hbm [shape: f32[128,128], index: 9, kind: input, shape index: {}]   ;;  %s1056_s10 = inlined_call_operand.vmem [shape: f32[1,128], index: 10, kind: input, shape index: {}]   ;;  %s1057_s11 = inlined_call_operand.hbm [shape: f32[8,128], index: 11, kind: output, shape index: {}]  }
   0x1   :  { %17 = vsyncpa [#allocation6], 0 }
   0x2   :  { %18 = vsyncpa [#allocation9], 0 }
   0x3   :  { %19 = vsyncpa [#allocation4], 0  ;;  %s868_s17 = smov [#allocation5]   ;;  %s869_s19 = smov [#allocation2]  }
   0x4   :  { %s45_s18 = sshll.u32 %s868_s17, 4  ;;  %s29_s20 = sshll.u32 %s869_s19, 4  ;;  %s46_s18 = int_to_ptr.vmem [resolvable:$true] %s45_s18  ;;  %s30_s20 = int_to_ptr.vmem [resolvable:$true] %s29_s20 }
   0x5   :  { %s768_s21 = scalar_lea.vmem %s46_s18, 2048  ;;  %p773_p1 = scmp.lt.s32.totalorder %s46_s18, %s46_s18 }
   0x6   :  { %p769_p0 = scmp.ne.s32.totalorder %s46_s18, %s768_s21  ;;  %p774_p2 = scmp.lt.s32.totalorder %s768_s21, %s768_s21 }
   0x8   :  { %p775_p3 = por %p774_p2, %p773_p1 }
   0xa   :  { %p776_p4 = pnand %p775_p3, %p769_p0 }
   0xc   :  { %779 = shalt.err (!%p776_p4)
}
   0xd   :  { %s870_s22 = smov 128   ;;  %s871_s23 = smov 8  }
   0xe   :  { %51 = dma.hbm_to_vmem [thread:$0]  %s1051_s5, 2048, %s46_s18, [#allocation6], %s870_s22, %s870_s22, %s871_s23  }
   0xf   :  { %s788_s26 = scalar_lea.vmem %s30_s20, 256  ;;  %p793_p6 = scmp.lt.s32.totalorder %s30_s20, %s30_s20 }
  0x10   :  { %p789_p5 = scmp.ne.s32.totalorder %s30_s20, %s788_s26  ;;  %p794_p7 = scmp.lt.s32.totalorder %s788_s26, %s788_s26 }
  0x12   :  { %p795_p8 = por %p794_p7, %p793_p6 }
  0x14   :  { %p796_p9 = pnand %p795_p8, %p789_p5 }
  0x16   :  { %799 = shalt.err (!%p796_p9)
}
  0x17   :  { %35 = dma.hbm_to_vmem [thread:$0]  %s1048_s2, 256, %s30_s20, [#allocation3], %s870_s22, %s870_s22, %s871_s23  }
  0x18   :  { %s872_s29 = smov [#allocation7]   ;;  %s873_s12 = smov [#allocation8]  }
  0x19   :  { %s59_s30 = sshll.u32 %s872_s29, 4  ;;  %s73_s13 = sshll.u32 %s873_s12, 4  ;;  %s60_s30 = int_to_ptr.vmem [resolvable:$true] %s59_s30  ;;  %s74_s13 = int_to_ptr.vmem [resolvable:$true] %s73_s13 }
  0x1a   :  { %s808_s5 = scalar_lea.vmem %s60_s30, 2048  ;;  %p813_p11 = scmp.lt.s32.totalorder %s60_s30, %s60_s30 }
  0x1b   :  { %p809_p10 = scmp.ne.s32.totalorder %s60_s30, %s808_s5  ;;  %p814_p12 = scmp.lt.s32.totalorder %s808_s5, %s808_s5 }
  0x1d   :  { %p815_p13 = por %p814_p12, %p813_p11 }
  0x1f   :  { %p816_p0 = pnand %p815_p13, %p809_p10 }
  0x21   :  { %819 = shalt.err (!%p816_p0)
}
  0x22   :  { %65 = dma.hbm_to_vmem [thread:$0]  %s1053_s7, 2048, %s60_s30, [#allocation6], %s870_s22, %s870_s22, %s871_s23  }
  0x23   :  { %s828_s2 = scalar_lea.vmem %s74_s13, 2048  ;;  %p833_p2 = scmp.lt.s32.totalorder %s74_s13, %s74_s13 }
  0x24   :  { %p829_p1 = scmp.ne.s32.totalorder %s74_s13, %s828_s2  ;;  %p834_p3 = scmp.lt.s32.totalorder %s828_s2, %s828_s2 }
  0x26   :  { %p835_p4 = por %p834_p3, %p833_p2 }
  0x28   :  { %p836_p5 = pnand %p835_p4, %p829_p1 }
  0x2a   :  { %839 = shalt.err (!%p836_p5)
}
  0x2b   :  { %79 = dma.hbm_to_vmem [thread:$0]  %s1055_s9, 2048, %s74_s13, [#allocation9], %s870_s22, %s870_s22, %s871_s23  }
  0x2c   :  { %860 = dma.done.wait [#allocation3], 256  }
  0x2d   :  { %861 = vsyncadd [#allocation3], 4294967040 }
  0x2e   :  { %862 = dma.done.wait [#allocation6], 4096  }
  0x2f   :  { %863 = vsyncadd [#allocation6], 4294963200 }
  0x30   :  { %864 = dma.done.wait [#allocation9], 2048  }
  0x31   :  { %865 = vsyncadd [#allocation9], 4294965248  ;;  %v874_v0 = vmov 0.0   ;;  %vm875_vm0 = vmmov 0   ;;  %vm103_vm1 = vcmask 1043456   ;;  %vm99_vm2 = vcmask 31744  }
  0x32   :  { %632 = vmatprep.subr.mxu1 %v874_v0  ;;  %634 = vmatprep.mubr.msk.f32.mxu1 %vm875_vm0, %v874_v0  ;;  %v98_v1 = vld [vmem:[%s1049_s3] sm:$0xf]  ;;  %v96_v3 = vld [vmem:[#allocation2 + $0x8] sm:$0xf]  ;;  %vm177_vm3 = vcmask 97280   ;;  %v276_v8 = vld [vmem:[#allocation5 + $0x68] sm:$0xff] }
  0x33   :  { %644 = vmatprep.subr.mxu0 %v874_v0  ;;  %676 = vmatprep.mubr.msk.f32.mxu0 %vm875_vm0, %v874_v0  ;;  %v97_v2 = vld [vmem:[%s1047_s1] sm:$0xff]  ;;  %v278_v4 = vld [vmem:[#allocation5 + $0x78] sm:$0xff]  ;;  %v275_v9 = vld [vmem:[#allocation5 + $0x60] sm:$0xff]  ;;  %s876_s25 = smov [#allocation10]  }
  0x34   :  { %633 = vmatpush3.msk.msra.mxu1 %vm103_vm1, %v98_v1  ;;  %v95_v5 = vld [vmem:[#allocation2] sm:$0xff]  ;;  %645 = vmatpush3.msra.mxu0 %v278_v4  ;;  %v274_v10 = vld [vmem:[#allocation5 + $0x58] sm:$0xff]  ;;  %v272_v12 = vld [vmem:[#allocation5 + $0x48] sm:$0xff]  ;;  %s557_s26 = sshll.u32 %s876_s25, 4  ;;  %s558_s26 = int_to_ptr.vmem [resolvable:$true] %s557_s26 }
  0x35   :  { %635 = vmatmul.mubr.msk.f32.vlgmr.msra.gmra.mxu1 %vm99_vm2, %v97_v2  ;;  %637 = vmatprep.subr.mxu1 %v874_v0  ;;  %v94_v6 = vld [vmem:[%s1046_s0] sm:$0xff]  ;;  %v271_v13 = vld [vmem:[#allocation5 + $0x40] sm:$0xff]  ;;  %v270_v14 = vld [vmem:[#allocation5 + $0x38] sm:$0xff]  ;;  %p845_p7 = scmp.lt.s32.totalorder %s558_s26, %s558_s26 }
  0x36   :  { %638 = vmatpush3.msk.msra.mxu1 %vm103_vm1, %v96_v3  ;;  %641 = vmatprep.mubr.msk.f32.mxu1 %vm875_vm0, %v874_v0  ;;  %v277_v7 = vld [vmem:[#allocation5 + $0x70] sm:$0xff]  ;;  %v268_v16 = vld [vmem:[#allocation5 + $0x28] sm:$0xff]  ;;  %v267_v17 = vld [vmem:[#allocation5 + $0x20] sm:$0xff] }
  0x37   :  { %639 = vmatprep.subr.mxu1 %v874_v0  ;;  %646 = vmatprep.subr.mxu0 %v874_v0  ;;  %v273_v11 = vld [vmem:[#allocation5 + $0x50] sm:$0xff]  ;;  %v266_v18 = vld [vmem:[#allocation5 + $0x18] sm:$0xff]  ;;  %v264_v20 = vld [vmem:[#allocation5 + $0x8] sm:$0xff] }
  0x38   :  { %640 = vmatpush3.msra.mxu1 %v95_v5  ;;  %647 = vmatpush3.msra.mxu0 %v277_v7  ;;  %v269_v15 = vld [vmem:[#allocation5 + $0x30] sm:$0xff]  ;;  %v263_v21 = vld [vmem:[#allocation5] sm:$0xff]  ;;  %v372_v22 = vld [vmem:[#allocation7 + $0x78] sm:$0xff] }
  0x39   :  { %642 = vmatmul.mubr.msk.f32.vlgmr.msra.gmra.mxu1 %vm177_vm3, %v94_v6  ;;  %648 = vmatprep.subr.mxu0 %v874_v0  ;;  %v265_v19 = vld [vmem:[#allocation5 + $0x10] sm:$0xff]  ;;  %v370_v24 = vld [vmem:[#allocation7 + $0x68] sm:$0xff]  ;;  %v369_v25 = vld [vmem:[#allocation7 + $0x60] sm:$0xff] }
  0x3a   :  { %679 = vmatprep.subr.mxu1 %v874_v0  ;;  %649 = vmatpush3.msra.mxu0 %v276_v8  ;;  %v371_v23 = vld [vmem:[#allocation7 + $0x70] sm:$0xff]  ;;  %v368_v26 = vld [vmem:[#allocation7 + $0x58] sm:$0xff]  ;;  %v366_v28 = vld [vmem:[#allocation7 + $0x48] sm:$0xff] }
  0x3b   :  { %711 = vmatprep.mubr.msk.f32.mxu1 %vm875_vm0, %v874_v0  ;;  %650 = vmatprep.subr.mxu0 %v874_v0  ;;  %v367_v27 = vld [vmem:[#allocation7 + $0x50] sm:$0xff]  ;;  %v365_v29 = vld [vmem:[#allocation7 + $0x40] sm:$0xff]  ;;  %v364_v30 = vld [vmem:[#allocation7 + $0x38] sm:$0xff] }
  0x3c   :  { %651 = vmatpush3.msra.mxu0 %v275_v9  ;;  %680 = vmatpush3.msra.mxu1 %v372_v22  ;;  %v363_v31 = vld [vmem:[#allocation7 + $0x30] sm:$0xff]  ;;  %v362_v32 = vld [vmem:[#allocation7 + $0x28] sm:$0xff]  ;;  %v361_v33 = vld [vmem:[#allocation7 + $0x20] sm:$0xff] }
  0x3d   :  { %652 = vmatprep.subr.mxu0 %v874_v0  ;;  %681 = vmatprep.subr.mxu1 %v874_v0  ;;  %v360_v34 = vld [vmem:[#allocation7 + $0x18] sm:$0xff]  ;;  %v572_v38 = vld [vmem:[%s1050_s4] ss:$0 sm:$0xff]  ;;  %v358_v44 = vld [vmem:[#allocation7 + $0x8] sm:$0xff] }
  0x3e   :  { %653 = vmatpush3.msra.mxu0 %v274_v10  ;;  %682 = vmatpush3.msra.mxu1 %v371_v23  ;;  %v359_v43 = vld [vmem:[#allocation7 + $0x10] sm:$0xff]  ;;  %v357_v45 = vld [vmem:[#allocation7] sm:$0xff]  ;;  %v465_v46 = vld [vmem:[#allocation8 + $0x78] sm:$0xff] }
  0x3f   :  { %654 = vmatprep.subr.mxu0 %v874_v0  ;;  %683 = vmatprep.subr.mxu1 %v874_v0  ;;  %v464_v47 = vld [vmem:[#allocation8 + $0x70] sm:$0xff]  ;;  %v463_v48 = vld [vmem:[#allocation8 + $0x68] sm:$0xff]  ;;  %v462_v49 = vld [vmem:[#allocation8 + $0x60] sm:$0xff] }
  0x40   :  { %655 = vmatpush3.msra.mxu0 %v273_v11  ;;  %684 = vmatpush3.msra.mxu1 %v370_v24  ;;  %v461_v50 = vld [vmem:[#allocation8 + $0x58] sm:$0xff]  ;;  %v460_v51 = vld [vmem:[#allocation8 + $0x50] sm:$0xff]  ;;  %v459_v52 = vld [vmem:[#allocation8 + $0x48] sm:$0xff] }
  0x41   :  { %656 = vmatprep.subr.mxu0 %v874_v0  ;;  %685 = vmatprep.subr.mxu1 %v874_v0  ;;  %v458_v53 = vld [vmem:[#allocation8 + $0x40] sm:$0xff]  ;;  %v457_v54 = vld [vmem:[#allocation8 + $0x38] sm:$0xff]  ;;  %v456_v55 = vld [vmem:[#allocation8 + $0x30] sm:$0xff] }
  0x42   :  { %657 = vmatpush3.msra.mxu0 %v272_v12  ;;  %686 = vmatpush3.msra.mxu1 %v369_v25  ;;  %v455_v56 = vld [vmem:[#allocation8 + $0x28] sm:$0xff]  ;;  %v454_v57 = vld [vmem:[#allocation8 + $0x20] sm:$0xff]  ;;  %v453_v58 = vld [vmem:[#allocation8 + $0x18] sm:$0xff]  ;;  %v543_v12 = vlaneseq }
  0x43   :  { %658 = vmatprep.subr.mxu0 %v874_v0  ;;  %687 = vmatprep.subr.mxu1 %v874_v0  ;;  %v452_v59 = vld [vmem:[#allocation8 + $0x10] sm:$0xff]  ;;  %v451_v2 = vld [vmem:[#allocation8 + $0x8] sm:$0xff]  ;;  %v450_v3 = vld [vmem:[#allocation8] sm:$0xff] }
  0x44   :  { %659 = vmatpush3.msra.mxu0 %v271_v13  ;;  %688 = vmatpush3.msra.mxu1 %v368_v26  ;;  %v573_v60 = vld [vmem:[%s1052_s6] ss:$0 sm:$0xff] }
  0x45   :  { %660 = vmatprep.subr.mxu0 %v874_v0  ;;  %689 = vmatprep.subr.mxu1 %v874_v0  ;;  %v574_v4 = vld [vmem:[%s1054_s8] ss:$0 sm:$0xff]  ;;  %s840_s8 = scalar_lea.vmem %s558_s26, 128 }
  0x46   :  { %661 = vmatpush3.msra.mxu0 %v270_v14  ;;  %690 = vmatpush3.msra.mxu1 %v367_v27  ;;  %v575_v8 = vld [vmem:[%s1056_s10] ss:$0 sm:$0xff]  ;;  %p841_p6 = scmp.ne.s32.totalorder %s558_s26, %s840_s8  ;;  %p846_p8 = scmp.lt.s32.totalorder %s840_s8, %s840_s8 }
  0x47   :  { %662 = vmatprep.subr.mxu0 %v874_v0  ;;  %691 = vmatprep.subr.mxu1 %v874_v0 }
  0x48   :  { %663 = vmatpush3.msra.mxu0 %v269_v15  ;;  %692 = vmatpush3.msra.mxu1 %v366_v28  ;;  %p847_p9 = por %p846_p8, %p845_p7 }
  0x49   :  { %664 = vmatprep.subr.mxu0 %v874_v0  ;;  %693 = vmatprep.subr.mxu1 %v874_v0 }
  0x4a   :  { %665 = vmatpush3.msra.mxu0 %v268_v16  ;;  %694 = vmatpush3.msra.mxu1 %v365_v29  ;;  %p848_p10 = pnand %p847_p9, %p841_p6 }
  0x4b   :  { %666 = vmatprep.subr.mxu0 %v874_v0  ;;  %695 = vmatprep.subr.mxu1 %v874_v0 }
  0x4c   :  { %667 = vmatpush3.msra.mxu0 %v267_v17  ;;  %696 = vmatpush3.msra.mxu1 %v364_v30 }
  0x4d   :  { %668 = vmatprep.subr.mxu0 %v874_v0  ;;  %697 = vmatprep.subr.mxu1 %v874_v0 }
  0x4e   :  { %669 = vmatpush3.msra.mxu0 %v266_v18  ;;  %698 = vmatpush3.msra.mxu1 %v363_v31 }
  0x4f   :  { %670 = vmatprep.subr.mxu0 %v874_v0  ;;  %699 = vmatprep.subr.mxu1 %v874_v0 }
  0x50   :  { %671 = vmatpush3.msra.mxu0 %v265_v19  ;;  %700 = vmatpush3.msra.mxu1 %v362_v32 }
  0x51   :  { %672 = vmatprep.subr.mxu0 %v874_v0  ;;  %701 = vmatprep.subr.mxu1 %v874_v0 }
  0x52   :  { %673 = vmatpush3.msra.mxu0 %v264_v20  ;;  %702 = vmatpush3.msra.mxu1 %v361_v33 }
  0x53   :  { %674 = vmatprep.subr.mxu0 %v874_v0  ;;  %703 = vmatprep.subr.mxu1 %v874_v0 }
  0x54   :  { %675 = vmatpush3.msra.mxu0 %v263_v21  ;;  %704 = vmatpush3.msra.mxu1 %v360_v34 }
  0x55   :  { %714 = vmatprep.subr.mxu0 %v874_v0  ;;  %705 = vmatprep.subr.mxu1 %v874_v0 }
  0x56   :  { %706 = vmatpush3.msra.mxu1 %v359_v43 }
  0x57   :  { %707 = vmatprep.subr.mxu1 %v874_v0 }
  0x58   :  { %708 = vmatpush3.msra.mxu1 %v358_v44 }
  0x59   :  { %709 = vmatprep.subr.mxu1 %v874_v0 }
  0x5a   :  { %710 = vmatpush3.msra.mxu1 %v357_v45 }
  0xf5   :  { %v173_v35 = vpop.f32.mrf.mxu1 }
  0xf7   :  { %v636_v36 = vpop.f32.mrf.mxu1 }
  0xf9   :  { %v250_v37 = vpop.f32.mrf.mxu1 }
  0xfa   :  { %v251_v39 = vadd.f32 %v250_v37, %v173_v35 }
  0xfb   :  { %v643_v40 = vpop.f32.mrf.mxu1 }
  0xfc   :  { %v261_v41 = vadd.f32 %v572_v38, %v251_v39 }
  0xfe   :  { %v262_v42 = vmax.f32 %v261_v41, 0.0 }
 0x100   :  { %677 = vmatmul.mubr.f32.vlgmr.msra.gmra.mxu0 %v262_v42 }
 0x101   :  { %746 = vmatprep.mubr.msk.f32.mxu0 %vm875_vm0, %v874_v0  ;;  %715 = vmatpush3.msra.mxu0 %v465_v46 }
 0x102   :  { %716 = vmatprep.subr.mxu0 %v874_v0 }
 0x103   :  { %717 = vmatpush3.msra.mxu0 %v464_v47 }
 0x104   :  { %718 = vmatprep.subr.mxu0 %v874_v0 }
 0x105   :  { %719 = vmatpush3.msra.mxu0 %v463_v48 }
 0x106   :  { %720 = vmatprep.subr.mxu0 %v874_v0 }
 0x107   :  { %721 = vmatpush3.msra.mxu0 %v462_v49 }
 0x108   :  { %722 = vmatprep.subr.mxu0 %v874_v0 }
 0x109   :  { %723 = vmatpush3.msra.mxu0 %v461_v50 }
 0x10a   :  { %724 = vmatprep.subr.mxu0 %v874_v0 }
 0x10b   :  { %725 = vmatpush3.msra.mxu0 %v460_v51 }
 0x10c   :  { %726 = vmatprep.subr.mxu0 %v874_v0 }
 0x10d   :  { %727 = vmatpush3.msra.mxu0 %v459_v52 }
 0x10e   :  { %728 = vmatprep.subr.mxu0 %v874_v0 }
 0x10f   :  { %729 = vmatpush3.msra.mxu0 %v458_v53 }
 0x110   :  { %730 = vmatprep.subr.mxu0 %v874_v0 }
 0x111   :  { %731 = vmatpush3.msra.mxu0 %v457_v54 }
 0x112   :  { %732 = vmatprep.subr.mxu0 %v874_v0 }
 0x113   :  { %733 = vmatpush3.msra.mxu0 %v456_v55 }
 0x114   :  { %734 = vmatprep.subr.mxu0 %v874_v0 }
 0x115   :  { %735 = vmatpush3.msra.mxu0 %v455_v56 }
 0x116   :  { %736 = vmatprep.subr.mxu0 %v874_v0 }
 0x117   :  { %737 = vmatpush3.msra.mxu0 %v454_v57 }
 0x118   :  { %738 = vmatprep.subr.mxu0 %v874_v0 }
 0x119   :  { %739 = vmatpush3.msra.mxu0 %v453_v58 }
 0x11a   :  { %740 = vmatprep.subr.mxu0 %v874_v0 }
 0x11b   :  { %741 = vmatpush3.msra.mxu0 %v452_v59 }
 0x11c   :  { %742 = vmatprep.subr.mxu0 %v874_v0 }
 0x11d   :  { %743 = vmatpush3.msra.mxu0 %v451_v2 }
 0x11e   :  { %744 = vmatprep.subr.mxu0 %v874_v0  ;;  %v544_v0 = vand.u32 127, %v543_v12 }
 0x11f   :  { %745 = vmatpush3.msra.mxu0 %v450_v3 }
 0x120   :  { %vm545_vm4 = vcmp.lt.s32.totalorder %v544_v0, 4 }
 0x1c0   :  { %v352_v61 = vpop.f32.mrf.mxu0 }
 0x1c1   :  { %v353_v62 = vadd.f32 %v573_v60, %v352_v61 }
 0x1c2   :  { %v678_v63 = vpop.f32.mrf.mxu0 }
 0x1c3   :  { %v356_v1 = vmax.f32 %v353_v62, 0.0 }
 0x1c5   :  { %712 = vmatmul.mubr.f32.vlgmr.msra.gmra.mxu1 %v356_v1 }
 0x285   :  { %v446_v5 = vpop.f32.mrf.mxu1 }
 0x286   :  { %v447_v6 = vadd.f32 %v574_v4, %v446_v5 }
 0x287   :  { %v713_v7 = vpop.f32.mrf.mxu1 }
 0x288   :  { %747 = vmatmul.mubr.f32.vlgmr.msra.gmra.mxu0 %v447_v6 }
 0x348   :  { %v539_v9 = vpop.f32.mrf.mxu0 }
 0x349   :  { %v540_v10 = vadd.f32 %v575_v8, %v539_v9 }
 0x34a   :  { %v748_v11 = vpop.f32.mrf.mxu0 }
 0x34b   :  { %758 = vtanh.f32 %v540_v10  ;;  %v547_v13 = vmax.f32 %v540_v10, -20.0 }
 0x34d   :  { %v548_v14 = vmin.f32 %v547_v13, 2.0 }
 0x358   :  { %v759_v15 = vpop.eup %758 }
 0x359   :  { %v549_v16 = vsel %vm545_vm4, %v759_v15, %v548_v14 }
 0x35a   :  { %550 = vst [vmem:[#allocation10] sm:$0xff] %v549_v16 }
 0x35b   :  { %851 = shalt.err (!%p848_p10)
}
 0x35c   :  { %560 = dma.vmem_to_hbm [thread:$0]  %s558_s26, 128, %s1057_s11, [#allocation4]  }
 0x35d   :  { %866 = dma.done.wait [#allocation4], 128  }
 0x35e   :  { %867 = vsyncadd [#allocation4], 4294967168 }
 0x35f   :  { %564 = vsyncpa [#allocation3], 1 }
 0x360   :  { %565 = vsyncpa [#allocation6], 1 }
 0x361   :  { %566 = vsyncpa [#allocation9], 1 }
 0x362   :  { %567 = vsyncpa [#allocation4], 1 }

</bundles_post_ra>
